<compile_context>
chip_gen: v7x
topology: tpu7x:2x2x1
jax: 0.10.0
libtpu: 0.0.40
codegen_flags: <defaults>
</compile_context>

<pallas_src>
import numpy as np
import jax
import jax.numpy as jnp
from jax import lax
from jax.experimental import pallas as pl
from jax.experimental.pallas import tpu as pltpu

LN10 = float(np.log(10.0))


def round_up(x, m):
    return ((x + m - 1) // m) * m


# --------------------------------------------------------------------------- config
class SpecConfig:
    """Mirror of the Spectrogram dataclass hyper-parameters (no torch modules)."""

    def __init__(self, sample_rate, hop_length, eps=1e-10, power=1,
                 win_length=None, n_fft=None):
        self.sample_rate = sample_rate
        self.hop_length = hop_length
        self.eps = eps
        self.power = power
        self.win_length = win_length or 4 * hop_length
        self.n_fft = n_fft or 2 ** ((self.win_length - 1).bit_length())

    @property
    def rate(self):
        return self.sample_rate / self.hop_length

    @property
    def channels(self):
        return self.n_fft // 2 + 1


# --------------------------------------------------------------- deterministic params
def hann_window(n):
    # torch.hann_window default (periodic=True)
    i = np.arange(n)
    return 0.5 * (1.0 - np.cos(2.0 * np.pi * i / n))


def pad_window_to_nfft(window, n_fft):
    """torch.stft/istft zero-pad the window to n_fft (centered) when win_length < n_fft."""
    wl = len(window)
    if wl >= n_fft:
        return np.asarray(window[:n_fft], np.float64)
    left = (n_fft - wl) // 2
    return np.pad(np.asarray(window, np.float64), (left, n_fft - wl - left))


def make_idft_win_basis(n_fft, window, n_cols):
    """(C, n_cols) basis: onesided inverse rDFT (real part) with synthesis window folded in.
    n_cols = r*hop >= n_fft; extra columns are zero (so hop-block OLA works for any hop)."""
    c = n_fft // 2 + 1
    w = pad_window_to_nfft(window, n_fft)
    k = np.arange(c)[:, None]
    n = np.arange(n_fft)[None, :]
    basis = np.cos(2.0 * np.pi * k * n / n_fft) / n_fft
    dup = np.full((c, 1), 2.0)
    dup[0, 0] = 1.0
    if n_fft % 2 == 0:
        dup[-1, 0] = 1.0
    full = np.zeros((c, n_cols), np.float32)
    full[:, :n_fft] = (basis * dup * w[None, :]).astype(np.float32)
    return full


def make_dft_win_basis_fused(n_fft, window, c_pad, n_rows):
    """(n_rows, 2*c_pad) fused cos|sin analysis basis; rows padded from n_fft to rr*hop with
    zeros (so hop-chunk framing works for any hop), columns padded to lane-dense 2*c_pad."""
    c = n_fft // 2 + 1
    w = pad_window_to_nfft(window, n_fft)
    n = np.arange(n_fft)[:, None]
    k = np.arange(c)[None, :]
    cosb = w[:, None] * np.cos(2.0 * np.pi * n * k / n_fft)
    sinb = w[:, None] * np.sin(2.0 * np.pi * n * k / n_fft)
    basis = np.zeros((n_rows, 2 * c_pad), np.float32)
    basis[:n_fft, :c] = cosb
    basis[:n_fft, c_pad:c_pad + c] = sinb
    return basis


def make_ola_envelope(window_nfft, n_frames, hop, n_fft):
    """Vectorized OLA of window^2 (torch.istft normalization envelope), length n_fft+(T-1)*hop."""
    w2 = np.asarray(window_nfft, np.float64) ** 2
    r = -(-n_fft // hop)
    w2p = np.pad(w2, (0, r * hop - n_fft)).reshape(r, hop)
    length_pad = (n_frames + r - 1) * hop
    env = np.zeros(length_pad, np.float64)
    for j in range(r):
        env[j * hop:(j + n_frames) * hop] += np.tile(w2p[j], n_frames)
    return env[:n_fft + (n_frames - 1) * hop].astype(np.float32)


def make_lerp_taps(l_in, l_out):
    """F.interpolate(mode='linear', align_corners=True): static lo index + frac."""
    if l_out == 1:
        return np.zeros(1, np.int32), np.zeros(1, np.float32)
    pos = np.arange(l_out) * (l_in - 1) / (l_out - 1)
    lo = np.minimum(np.floor(pos).astype(np.int64), l_in - 1).astype(np.int32)
    frac = (pos - lo).astype(np.float32)
    return lo, frac


# -------------------------------------------------------------------- Pallas kernels
def istft_ola_call(spec_btc, inv_env, basis_main, basis_rem,
                   eps, t_max, tile_t, hop, r, k_main):
    """K1: from_db + windowed inverse-rDFT + overlap-add + 1/envelope, fully fused.

    spec_btc : (B, T_pad, C)   db spectrogram; rows >= t_max are tiling padding (masked).
    inv_env  : (T_pad, hop)    reciprocal OLA window^2 envelope (0 where invalid/padded).
    out      : (B, T_pad, hop) normalized waveform hop-blocks; block m = wav[m*hop:(m+1)*hop].
    """
    b, t_pad, c = spec_btc.shape
    ncol = basis_main.shape[1]                     # r * hop (basis zero-padded past n_fft)
    has_rem = basis_rem is not None
    rem_rows = basis_rem.shape[0] if has_rem else 0
    halo = r - 1
    nb8 = tile_t // 8

    def kernel(*refs):
        if has_rem:
            cur_ref, prv_ref, bm_ref, brem_ref, envi_ref, o_ref = refs
        else:
            cur_ref, prv_ref, bm_ref, envi_ref, o_ref = refs
        t0 = pl.program_id(1) * tile_t
        xc = cur_ref[0]                                            # (tile_t, C)
        if halo > 0:
            xp = prv_ref[0][8 - halo:]                             # last r-1 rows of prev tile
            x = jnp.concatenate([xp, xc], axis=0)                  # (tile_t+halo, C)
        else:
            x = xc
        rows = lax.broadcasted_iota(jnp.int32, (tile_t + halo, 1), 0) + (t0 - halo)
        lin = jnp.maximum(jnp.exp(x * LN10), eps)                  # from_db: 10**x clamp_min
        lin = jnp.where((rows >= 0) & (rows < t_max), lin, 0.0)    # kill tiling padding rows
        frames = jnp.dot(lin[:, :k_main].astype(jnp.bfloat16), bm_ref[...],
                         preferred_element_type=jnp.float32)       # (tile_t+halo, r*hop)
        if has_rem:
            if rem_rows == 1:
                frames = frames + lin[:, k_main:] * brem_ref[...]  # rank-1 Nyquist update
            else:
                frames = frames + jnp.dot(lin[:, k_main:].astype(jnp.bfloat16),
                                          brem_ref[...],
                                          preferred_element_type=jnp.float32)
        # local overlap-add: output block q (global t0+q) = sum_j frames[t0+q-j, chunk j]
        acc = frames[halo:halo + tile_t, 0:hop]
        for j in range(1, r):
            s = halo - j
            acc = acc + frames[s:s + tile_t, j * hop:(j + 1) * hop]
        o_ref[0] = acc * envi_ref[...]                             # torch.istft 1/OLA(win^2)

    in_specs = [
        pl.BlockSpec((1, tile_t, c), lambda i, j: (i, j, 0)),
        pl.BlockSpec((1, 8, c), lambda i, j: (i, jnp.maximum(j * nb8 - 1, 0), 0)),
        pl.BlockSpec((k_main, ncol), lambda i, j: (0, 0)),
    ]
    args = [spec_btc, spec_btc, basis_main]
    if has_rem:
        in_specs.append(pl.BlockSpec((rem_rows, ncol), lambda i, j: (0, 0)))
        args.append(basis_rem)
    in_specs.append(pl.BlockSpec((tile_t, hop), lambda i, j: (j, 0)))
    args.append(inv_env)

    return pl.pallas_call(
        kernel,
        out_shape=jax.ShapeDtypeStruct((b, t_pad, hop), jnp.float32),
        grid=(b, t_pad // tile_t),
        in_specs=in_specs,
        out_specs=pl.BlockSpec((1, tile_t, hop), lambda i, j: (i, j, 0)),
        compiler_params=pltpu.CompilerParams(
            dimension_semantics=("parallel", "parallel"),
            vmem_limit_bytes=32 * 1024 * 1024),
    )(*args)


def resample_lerp_call(wav_lo, wav_hi, frac, tile_l):
    """K2: 2-tap linear-interp blend, tiled over the output length (f32 to match reference)."""
    b, l = wav_lo.shape

    def kernel(lo_ref, hi_ref, fr_ref, o_ref):
        lo = lo_ref[...]
        o_ref[...] = lo + fr_ref[...] * (hi_ref[...] - lo)

    return pl.pallas_call(
        kernel,
        out_shape=jax.ShapeDtypeStruct((b, l), jnp.float32),
        grid=(l // tile_l,),
        in_specs=[pl.BlockSpec((b, tile_l), lambda j: (0, j)),
                  pl.BlockSpec((b, tile_l), lambda j: (0, j)),
                  pl.BlockSpec((1, tile_l), lambda j: (0, j))],
        out_specs=pl.BlockSpec((b, tile_l), lambda j: (0, j)),
        compiler_params=pltpu.CompilerParams(
            dimension_semantics=("parallel",),
            vmem_limit_bytes=32 * 1024 * 1024),
    )(wav_lo, wav_hi, frac)


def tgt_spec_call(chunks, basis, shift, c_pad, eps, power, tile_t, rr, hop, t_frames_pad):
    """K3: framing + windowed rDFT + |.|^power + to_db + log-domain normalization, fused.

    chunks : (B, M, hop)        hop-sized waveform chunks of the reflect-padded wave.
    basis  : (rr*hop, 2*c_pad)  fused cos|sin basis (bf16), zero rows past n_fft.
    shift  : (1, 1)             power * log10(1 / max|wav|)  (applied additively in db).
    out    : (B, T_pad, c_pad)  db spectrogram; frame t uses chunks[t : t+rr].
    """
    b, m, _ = chunks.shape
    log_eps = float(np.log10(eps))
    coef = 0.5 * float(power)
    halo = rr - 1
    nb8 = tile_t // 8
    last_blk8 = m // 8 - 1

    def kernel(cur_ref, nxt_ref, b_ref, sh_ref, o_ref):
        cur = cur_ref[0]                                       # (tile_t, hop)
        if halo > 0:
            ext = jnp.concatenate([cur, nxt_ref[0][:halo]], axis=0)
        else:
            ext = cur
        acc = None
        for s in range(rr):                                    # rr shifted matmuls = framing
            blk = ext[s:s + tile_t].astype(jnp.bfloat16)
            term = jnp.dot(blk, b_ref[s * hop:(s + 1) * hop, :],
                           preferred_element_type=jnp.float32)
            acc = term if acc is None else acc + term
        re = acc[:, :c_pad]
        im = acc[:, c_pad:]
        p2 = re * re + im * im
        # to_db(clamp(|X|^p * inv_scale^p, eps)) = max(0.5*p*log10(p2) + p*log10(inv_scale),
        #                                              log10(eps)) -> single log per element.
        val = coef * jnp.log10(jnp.maximum(p2, 1e-38)) + sh_ref[...]
        o_ref[0] = jnp.maximum(val, log_eps)

    return pl.pallas_call(
        kernel,
        out_shape=jax.ShapeDtypeStruct((b, t_frames_pad, c_pad), jnp.float32),
        grid=(b, t_frames_pad // tile_t),
        in_specs=[pl.BlockSpec((1, tile_t, hop), lambda i, j: (i, j, 0)),
                  pl.BlockSpec((1, 8, hop),
                               lambda i, j: (i, jnp.minimum((j + 1) * nb8, last_blk8), 0)),
                  pl.BlockSpec(basis.shape, lambda i, j: (0, 0)),
                  pl.BlockSpec((1, 1), lambda i, j: (0, 0))],
        out_specs=pl.BlockSpec((1, tile_t, c_pad), lambda i, j: (i, j, 0)),
        compiler_params=pltpu.CompilerParams(
            dimension_semantics=("parallel", "parallel"),
            vmem_limit_bytes=32 * 1024 * 1024),
    )(chunks, chunks, basis, shift)


# ------------------------------------------------------------------------ converter
class SpectrogramConverterPallas:
    """JAX/Pallas port of SpectrogramConverter.forward (method='istft' path)."""

    MAX_TILE_T = 512          # frames per kernel step (multiple of 8)
    MAX_TILE_L = 16384        # resample output samples per kernel step (multiple of 128)

    def __init__(self, src: SpecConfig, tgt: SpecConfig):
        self.src = src
        self.tgt = tgt
        self.src_window = hann_window(src.win_length)
        self.tgt_window = hann_window(tgt.win_length)

        # K1 basis, columns padded to r*hop, split so the MXU contraction K is a 128 multiple.
        c_src = src.channels
        self.r_src = -(-src.n_fft // src.hop_length)
        assert self.r_src - 1 <= 8, "TODO(synk): n_fft > 9*hop halo not supported"
        ncol = self.r_src * src.hop_length
        idft = make_idft_win_basis(src.n_fft, self.src_window, ncol)     # (C, r*hop) f32
        k_main = (c_src // 128) * 128 if c_src > 128 else c_src
        self.k_main = k_main
        self.idft_main = jnp.asarray(idft[:k_main]).astype(jnp.bfloat16)
        if k_main < c_src:
            rem = idft[k_main:]
            rem_dtype = jnp.float32 if rem.shape[0] == 1 else jnp.bfloat16
            self.idft_rem = jnp.asarray(rem).astype(rem_dtype)
        else:
            self.idft_rem = None

        # K3 fused cos|sin basis, rows padded to rr*hop, columns padded lane-dense.
        self.c_tgt = tgt.channels
        self.c_pad = round_up(self.c_tgt, 128)
        self.rr_tgt = -(-tgt.n_fft // tgt.hop_length)
        assert self.rr_tgt - 1 <= 8, "TODO(synk): n_fft > 9*hop halo not supported"
        nrow = self.rr_tgt * tgt.hop_length
        self.dft_basis = jnp.asarray(
            make_dft_win_basis_fused(tgt.n_fft, self.tgt_window, self.c_pad, nrow)
        ).astype(jnp.bfloat16)

    @property
    def wav_scale_factor(self):
        return self.tgt.sample_rate / self.src.sample_rate

    @property
    def spec_scale_factor(self):
        return self.tgt.rate / self.src.rate

    def __call__(self, spec_list, method="istft"):
        if method != "istft":
            # TODO(synk): griffin_lim inverse (random-phase, iterative) not ported.
            raise NotImplementedError("only method='istft' is implemented")
        if self.src is self.tgt:
            return spec_list

        lengths = [int(s.shape[0]) for s in spec_list]
        t_max = max(lengths)
        b = len(spec_list)

        # pad_sequence (zeros, matching the PyTorch reference) + keep (B, T, C) layout.
        padded = [jnp.pad(s.astype(jnp.float32), ((0, t_max - s.shape[0]), (0, 0)))
                  for s in spec_list]
        spec_btc = jnp.stack(padded, axis=0)               # (B, T, C_src)

        # ---- K1: from_db + windowed IDFT + overlap-add + 1/envelope --------------------
        n_src, hop_src = self.src.n_fft, self.src.hop_length
        r = self.r_src
        m_valid = t_max + r - 1                            # hop-blocks in the raw OLA output
        tile_t = min(self.MAX_TILE_T, round_up(m_valid, 8))
        t_pad = round_up(m_valid, tile_t)
        spec_btc = jnp.pad(spec_btc, ((0, 0), (0, t_pad - t_max), (0, 0)))

        l_full = n_src + (t_max - 1) * hop_src
        env = make_ola_envelope(pad_window_to_nfft(self.src_window, n_src),
                                t_max, hop_src, n_src)     # (l_full,)
        # NOTE: torch.istft raises if the trimmed envelope has zeros (very short inputs);
        # here those samples become 0 instead (they are trimmed for normal-length inputs).
        inv_env = np.where(env > 1e-11, 1.0 / env, 0.0).astype(np.float32)
        inv_env = np.pad(inv_env, (0, t_pad * hop_src - l_full)).reshape(t_pad, hop_src)

        wav_blocks = istft_ola_call(spec_btc, jnp.asarray(inv_env),
                                    self.idft_main, self.idft_rem, self.src.eps,
                                    t_max, tile_t, hop_src, r, self.k_main)
        wav = wav_blocks[:, :m_valid].reshape(b, m_valid * hop_src)[:, :l_full]
        half = n_src // 2                                  # center=True trim
        wav = wav[:, half:l_full - half]

        # length adjustment inside Spectrogram.inverse (len(wav)=B < target_length here)
        target_length = int(t_max * hop_src)
        if wav.shape[1] < target_length:
            wav = jnp.pad(wav, ((0, 0), (0, target_length - wav.shape[1])))
        else:
            wav = wav[:, :target_length]

        # global 1/max|wav| normalization, applied additively in the log domain in K3
        # (no eps guard, matching the reference: all-zero input -> -inf/NaN).
        shift = ((-float(self.tgt.power)) * jnp.log10(jnp.max(jnp.abs(wav)))
                 ).reshape(1, 1).astype(jnp.float32)

        # ---- K2: 2-tap linear resample (align_corners=True) ---------------------------
        l_in = target_length
        l_out = int(l_in * self.wav_scale_factor)
        lo, frac = make_lerp_taps(l_in, l_out)
        hi = np.minimum(lo + 1, l_in - 1)
        # TODO(synk): monotone tap gather stays in XLA glue (no robust Pallas TPU gather).
        wav_lo = jnp.take(wav, jnp.asarray(lo, jnp.int32), axis=1)
        wav_hi = jnp.take(wav, jnp.asarray(hi, jnp.int32), axis=1)
        frac_j = jnp.asarray(frac)[None, :]
        tile_l = min(self.MAX_TILE_L, round_up(l_out, 128))
        l_pad = round_up(l_out, tile_l)
        if l_pad > l_out:
            wav_lo = jnp.pad(wav_lo, ((0, 0), (0, l_pad - l_out)))
            wav_hi = jnp.pad(wav_hi, ((0, 0), (0, l_pad - l_out)))
            frac_j = jnp.pad(frac_j, ((0, 0), (0, l_pad - l_out)))
        wav2 = resample_lerp_call(wav_lo, wav_hi, frac_j, tile_l)[:, :l_out]   # (B, L_out) f32

        # ---- K3: reflect pad + hop-chunking + fused framing/rDFT/to_db ----------------
        n_tgt, hop_tgt = self.tgt.n_fft, self.tgt.hop_length
        rr = self.rr_tgt
        pad_t = n_tgt // 2
        wav_p = jnp.pad(wav2, ((0, 0), (pad_t, pad_t)), mode="reflect")
        t_new = 1 + l_out // hop_tgt
        tile_t2 = min(self.MAX_TILE_T, round_up(t_new, 8))
        t2_pad = round_up(t_new, tile_t2)
        m3 = max(t2_pad + 8, round_up(-(-wav_p.shape[1] // hop_tgt), 8))
        need = m3 * hop_tgt
        wav_p = jnp.pad(wav_p, ((0, 0), (0, need - wav_p.shape[1])))
        chunks = wav_p.reshape(b, m3, hop_tgt)             # (B, M, hop) hop-sized chunks

        spec_tgt = tgt_spec_call(chunks, self.dft_basis, shift, self.c_pad,
                                 self.tgt.eps, self.tgt.power, tile_t2, rr, hop_tgt, t2_pad)
        # drop_last + strip T / lane-density padding -> (B, T_new-1, C_tgt)
        spec_tgt = spec_tgt[:, :t_new - 1, :self.c_tgt]

        # per-sample length slicing ('b t c' layout already)
        out = [spec_tgt[i, :int(l * self.spec_scale_factor)]
               for i, l in enumerate(lengths)]
        return out


# ------------------------------------------------------------------------------ main
if __name__ == "__main__":
    # small, consistent shapes: src hop=64 -> win=256, n_fft=256, C=129
    #                           tgt hop=32 -> win=128, n_fft=128, C=65
    src_cfg = SpecConfig(sample_rate=4000, hop_length=64)
    tgt_cfg = SpecConfig(sample_rate=2000, hop_length=32)
    converter = SpectrogramConverterPallas(src_cfg, tgt_cfg)

    key = jax.random.PRNGKey(0)
    k1, k2 = jax.random.split(key)
    # list of (t, c) db-domain spectrograms with different lengths
    spec_a = -2.0 + 1.5 * jax.random.normal(k1, (8, src_cfg.channels), jnp.float32)
    spec_b = -2.0 + 1.5 * jax.random.normal(k2, (6, src_cfg.channels), jnp.float32)

    outs = converter([spec_a, spec_b], method="istft")
    for o in outs:
        jax.block_until_ready(o)
    assert outs[0].shape == (8, tgt_cfg.channels)
    assert outs[1].shape == (6, tgt_cfg.channels)
    print("KERNEL_OK")
</pallas_src>

<mosaic_0001>
module attributes {stable_mosaic.version = 11 : i64} {
  func.func @kernel(%arg0: i32, %arg1: i32, %arg2: memref<1x16x129xf32, #tpu.memory_space<vmem>>, %arg3: memref<1x8x129xf32, #tpu.memory_space<vmem>>, %arg4: memref<128x256xbf16, #tpu.memory_space<vmem>>, %arg5: memref<1x256xf32, #tpu.memory_space<vmem>>, %arg6: memref<16x64xf32, #tpu.memory_space<vmem>>, %arg7: memref<1x16x64xf32, #tpu.memory_space<vmem>>) attributes {dimension_semantics = [#tpu.dimension_semantics<parallel>, #tpu.dimension_semantics<parallel>], iteration_bounds = array<i64: 2, 1>, scalar_prefetch = 0 : i64, scratch_operands = 0 : i64, tpu.core_type = #tpu.core_type<tc>, window_params = [{transform_indices = @transform_0, window_bounds = array<i64: 1, 16, 129>}, {transform_indices = @transform_1, window_bounds = array<i64: 1, 8, 129>}, {pipeline_mode = #tpu.pipeline_mode<synchronous>, transform_indices = @transform_2, window_bounds = array<i64: 128, 256>}, {pipeline_mode = #tpu.pipeline_mode<synchronous>, transform_indices = @transform_3, window_bounds = array<i64: 1, 256>}, {transform_indices = @transform_4, window_bounds = array<i64: 16, 64>}, {transform_indices = @transform_5, window_bounds = array<i64: 1, 16, 64>}]} {
    %c16_i32 = arith.constant 16 : i32
    %0 = arith.muli %arg1, %c16_i32 : i32
    %c0 = arith.constant 0 : index
    %c0_0 = arith.constant 0 : index
    %c0_1 = arith.constant 0 : index
    %1 = vector.load %arg2[%c0, %c0_0, %c0_1] : memref<1x16x129xf32, #tpu.memory_space<vmem>>, vector<1x16x129xf32>
    %2 = vector.shape_cast %1 : vector<1x16x129xf32> to vector<16x129xf32>
    %c0_2 = arith.constant 0 : index
    %c0_3 = arith.constant 0 : index
    %c0_4 = arith.constant 0 : index
    %3 = vector.load %arg3[%c0_2, %c0_3, %c0_4] : memref<1x8x129xf32, #tpu.memory_space<vmem>>, vector<1x8x129xf32>
    %4 = vector.shape_cast %3 : vector<1x8x129xf32> to vector<8x129xf32>
    %5 = vector.extract_strided_slice %4 {offsets = [5, 0], sizes = [3, 129], strides = [1, 1]} : vector<8x129xf32> to vector<3x129xf32>
    %6 = tpu.concatenate %5, %2 in 0 : vector<3x129xf32>, vector<16x129xf32> -> vector<19x129xf32>
    %7 = tpu.iota {dimensions = array<i32: 0>} : vector<19x1xi32>
    %c3_i32 = arith.constant 3 : i32
    %8 = arith.subi %0, %c3_i32 : i32
    %9 = vector.broadcast %8 : i32 to vector<19x1xi32>
    %10 = arith.addi %7, %9 : vector<19x1xi32>
    %cst = arith.constant 2.30258512 : f32
    %11 = vector.broadcast %cst : f32 to vector<19x129xf32>
    %12 = arith.mulf %6, %11 : vector<19x129xf32>
    %13 = math.exp %12 : vector<19x129xf32>
    %cst_5 = arith.constant 1.000000e-10 : f32
    %14 = vector.broadcast %cst_5 : f32 to vector<19x129xf32>
    %15 = arith.maximumf %13, %14 : vector<19x129xf32>
    %c0_i32 = arith.constant 0 : i32
    %16 = vector.broadcast %c0_i32 : i32 to vector<19x1xi32>
    %17 = arith.cmpi sge, %10, %16 : vector<19x1xi32>
    %c8_i32 = arith.constant 8 : i32
    %18 = vector.broadcast %c8_i32 : i32 to vector<19x1xi32>
    %19 = arith.cmpi slt, %10, %18 : vector<19x1xi32>
    %20 = arith.andi %17, %19 : vector<19x1xi1>
    %cst_6 = arith.constant 0.000000e+00 : f32
    %21 = vector.shape_cast %20 : vector<19x1xi1> to vector<19x1xi1>
    %22 = vector.broadcast %21 : vector<19x1xi1> to vector<19x129xi1>
    %23 = vector.broadcast %cst_6 : f32 to vector<19x129xf32>
    %24 = arith.select %22, %15, %23 : vector<19x129xi1>, vector<19x129xf32>
    %25 = vector.extract_strided_slice %24 {offsets = [0, 0], sizes = [19, 128], strides = [1, 1]} : vector<19x129xf32> to vector<19x128xf32>
    %26 = arith.truncf %25 : vector<19x128xf32> to vector<19x128xbf16>
    %c0_7 = arith.constant 0 : index
    %c0_8 = arith.constant 0 : index
    %27 = vector.load %arg4[%c0_7, %c0_8] : memref<128x256xbf16, #tpu.memory_space<vmem>>, vector<128x256xbf16>
    %cst_9 = arith.constant dense<0.000000e+00> : vector<19x256xf32>
    %28 = tpu.matmul %26, %27, %cst_9 {dimension_numbers = #tpu.dot_dimension_numbers<[1], [0], [0], [1], [0, 0, 1, 1], [], []>} : vector<19x128xbf16>, vector<128x256xbf16>, vector<19x256xf32> -> vector<19x256xf32>
    %29 = vector.extract_strided_slice %24 {offsets = [0, 128], sizes = [19, 1], strides = [1, 1]} : vector<19x129xf32> to vector<19x1xf32>
    %c0_10 = arith.constant 0 : index
    %c0_11 = arith.constant 0 : index
    %30 = vector.load %arg5[%c0_10, %c0_11] : memref<1x256xf32, #tpu.memory_space<vmem>>, vector<1x256xf32>
    %31 = vector.broadcast %29 : vector<19x1xf32> to vector<19x256xf32>
    %32 = vector.broadcast %30 : vector<1x256xf32> to vector<19x256xf32>
    %33 = arith.mulf %31, %32 : vector<19x256xf32>
    %34 = arith.addf %28, %33 : vector<19x256xf32>
    %35 = vector.extract_strided_slice %34 {offsets = [3, 0], sizes = [16, 64], strides = [1, 1]} : vector<19x256xf32> to vector<16x64xf32>
    %36 = vector.extract_strided_slice %34 {offsets = [2, 64], sizes = [16, 64], strides = [1, 1]} : vector<19x256xf32> to vector<16x64xf32>
    %37 = arith.addf %35, %36 : vector<16x64xf32>
    %38 = vector.extract_strided_slice %34 {offsets = [1, 128], sizes = [16, 64], strides = [1, 1]} : vector<19x256xf32> to vector<16x64xf32>
    %39 = arith.addf %37, %38 : vector<16x64xf32>
    %40 = vector.extract_strided_slice %34 {offsets = [0, 192], sizes = [16, 64], strides = [1, 1]} : vector<19x256xf32> to vector<16x64xf32>
    %41 = arith.addf %39, %40 : vector<16x64xf32>
    %c0_12 = arith.constant 0 : index
    %c0_13 = arith.constant 0 : index
    %42 = vector.load %arg6[%c0_12, %c0_13] : memref<16x64xf32, #tpu.memory_space<vmem>>, vector<16x64xf32>
    %43 = arith.mulf %41, %42 : vector<16x64xf32>
    %c0_14 = arith.constant 0 : index
    %c0_15 = arith.constant 0 : index
    %c0_16 = arith.constant 0 : index
    %44 = vector.load %arg7[%c0_14, %c0_15, %c0_16] : memref<1x16x64xf32, #tpu.memory_space<vmem>>, vector<1x16x64xf32>
    %45 = vector.shape_cast %44 : vector<1x16x64xf32> to vector<16x64xf32>
    %46 = vector.shape_cast %43 : vector<16x64xf32> to vector<1x16x64xf32>
    tpu.vector_store %arg7[%c0_14, %c0_15, %c0_16], %46 {strides = array<i32>} : memref<1x16x64xf32, #tpu.memory_space<vmem>>, vector<1x16x64xf32>,
    return
  }
  func.func @transform_0(%arg0: i32, %arg1: i32) -> (i32, i32, i32) {
    %c0_i32 = arith.constant 0 : i32
    %c0_i32_0 = arith.constant 0 : i32
    return %arg0, %arg1, %c0_i32 : i32, i32, i32
  }
  func.func @transform_1(%arg0: i32, %arg1: i32) -> (i32, i32, i32) {
    %c2_i32 = arith.constant 2 : i32
    %0 = arith.muli %arg1, %c2_i32 : i32
    %c1_i32 = arith.constant 1 : i32
    %1 = arith.subi %0, %c1_i32 : i32
    %c0_i32 = arith.constant 0 : i32
    %2 = arith.maxsi %1, %c0_i32 : i32
    %c0_i32_0 = arith.constant 0 : i32
    %c0_i32_1 = arith.constant 0 : i32
    return %arg0, %2, %c0_i32_0 : i32, i32, i32
  }
  func.func @transform_2(%arg0: i32, %arg1: i32) -> (i32, i32) {
    %c0_i32 = arith.constant 0 : i32
    %c0_i32_0 = arith.constant 0 : i32
    %c0_i32_1 = arith.constant 0 : i32
    return %c0_i32, %c0_i32_0 : i32, i32
  }
  func.func @transform_3(%arg0: i32, %arg1: i32) -> (i32, i32) {
    %c0_i32 = arith.constant 0 : i32
    %c0_i32_0 = arith.constant 0 : i32
    %c0_i32_1 = arith.constant 0 : i32
    return %c0_i32, %c0_i32_0 : i32, i32
  }
  func.func @transform_4(%arg0: i32, %arg1: i32) -> (i32, i32) {
    %c0_i32 = arith.constant 0 : i32
    %c0_i32_0 = arith.constant 0 : i32
    return %arg1, %c0_i32 : i32, i32
  }
  func.func @transform_5(%arg0: i32, %arg1: i32) -> (i32, i32, i32) {
    %c0_i32 = arith.constant 0 : i32
    %c0_i32_0 = arith.constant 0 : i32
    return %arg0, %arg1, %c0_i32 : i32, i32, i32
  }
}

</mosaic_0001>

<bundles_post_ra>
// kernel: tpu_custom_call.1
= control target key start
LH: loop header
LB: loop body
LE: loop exit
PB: predicated region body
PF: predicated region fallthrough
CT: control target
= control target key end

     0   :  { %s1618_s0 = inlined_call_operand.hbm [shape: f32[2,16,129], index: 0, kind: input, shape index: {}]   ;;  %s1619_s1 = inlined_call_operand.hbm [shape: f32[2,16,129], index: 1, kind: input, shape index: {}]   ;;  %s1620_s2 = inlined_call_operand.hbm [shape: bf16[128,256], index: 2, kind: input, shape index: {}]   ;;  %s1621_s3 = inlined_call_operand.vmem [shape: f32[1,256], index: 3, kind: input, shape index: {}]   ;;  %s1622_s4 = inlined_call_operand.hbm [shape: f32[16,64], index: 4, kind: input, shape index: {}]   ;;  %s1623_s5 = inlined_call_operand.hbm [shape: f32[2,16,64], index: 5, kind: output, shape index: {}]  }
   0x1   :  { %1630 = sst [smem:[#allocation18_spill]] %s1618_s0 }
   0x2   :  { %1631 = sst [smem:[#allocation19_spill]] %s1620_s2 }
   0x3   :  { %1632 = sst [smem:[#allocation20_spill]] %s1622_s4 }
   0x4   :  { %10 = vsyncpa [#allocation3], 0 }
   0x5   :  { %12 = vsyncpa [#allocation3 + $0x1], 0 }
   0x6   :  { %13 = vsyncpa [#allocation6], 0 }
   0x7   :  { %15 = vsyncpa [#allocation6 + $0x1], 0 }
   0x8   :  { %16 = vsyncpa [#allocation9], 0 }
   0x9   :  { %17 = vsyncpa [#allocation4], 0 }
   0xa   :  { %19 = vsyncpa [#allocation4 + $0x1], 0  ;;  %s1299_s18 = smov 0   ;;  %s1301_s19 = smov 0  }
   0xb   :  { %s1303_s20 = smov 0   ;;  %s1305_s21 = smov 0  }
   0xc   :  { %s1307_s22 = smov 0   ;;  %s1309_s23 = smov 0  }
   0xd LB: > { %s1330_s24 = sadd.s32 4294967295, %s1252_s23   ;;  %s850_s25 = sadd.s32 4294967294, %s1252_s23   ;;  %s1252_s23 = sphi %s1309_s23, %s25_s23   ;;  %s1248_s22 = sphi %s1307_s22, %s1661_s22   ;;  %s1244_s21 = sphi %s1305_s21, %s1660_s21   ;;  %s1240_s20 = sphi %s1303_s20, %s1659_s20   ;;  %s1236_s19 = sphi %s1301_s19, %s1658_s19   ;;  %s1232_s18 = sphi %s1299_s18, %s1657_s18  }
   0xe   : > { %p59_p0 = scmp.ne.s32.totalorder %s1236_s19, %s1232_s18  ;;  %p1624_p1 = scmp.eq.s32.totalorder %s1330_s24, 0 }
   0xf   : > { %p195_p3 = scmp.eq.s32.totalorder %s850_s25, 1  ;;  %p851_p5 = scmp.ge.s32.totalorder %s1252_s23, 1 }
  0x10   : > { %p1339_p4 = por %p1624_p1, %p59_p0  ;;  %p202_p7 = scmp.lt.s32.totalorder %s1252_s23, 3 }
  0x11   : > { %p1344_p6 = por %p195_p3, %p59_p0  ;;  %s1254_s29 = smov [#allocation7]  }
  0x12   : > { %s1633_s26 = scalar_select %p1339_p4, 1, 0 }
  0x13   : > { %s1634_s27 = scalar_select %p1344_p6, 1, 0 }
  0x14   : > { %p1349_p8 = pnand %p851_p5, %p202_p7  ;;  %s214_s30 = sshll.u32 %s1254_s29, 4  ;;  %s1353_s30 = int_to_ptr.vmem [resolvable:$true] %s214_s30 }
  0x15   : > { %s1255_s7 = smov [#allocation8]   ;;  %s1637_s2 = sld [smem:[#allocation19_spill]] }
  0x16   : > { %s1635_s28 = scalar_select %p1349_p8, 1, 0 }
  0x17   : > { %p924_p9 = pneg %p1349_p8  ;;  %s233_s8 = sshll.u32 %s1255_s7, 4  ;;  %s1364_s8 = int_to_ptr.vmem [resolvable:$true] %s233_s8 }
  0x19   : > { %p1360_p11 = pnand %p924_p9, %p1624_p1 }
  0x1b   : > { %s1042_s11 = scalar_lea.hbm %s1637_s2, 2048  ;;  %p1044_p13 = pneg %p1360_p11 }
  0x1c   : > { %p1043_p12 = scmp.ne.s32.totalorder %s1637_s2, %s1042_s11  ;;  %p1049_p5 = scmp.lt.u32.totalorder %s1042_s11, %s1637_s2 }
  0x1e   : > { %p1045_p0 = pnand %p1044_p13, %p1043_p12 }
  0x20   : > { %p1046_p3 = pneg %p1045_p0 }
  0x22   : > { %p1051_p7 = pnand %p1049_p5, %p1046_p3 }
  0x24   : > { %1054 = shalt.err (!%p1051_p7)
}
  0x25   : > { %s1055_s16 = scalar_lea.vmem %s1353_s30, 2048  ;;  %p1063_p2 = scmp.lt.s32.totalorder %s1353_s30, %s1353_s30 }
  0x26   : > { %p1056_p9 = scmp.ne.s32.totalorder %s1353_s30, %s1055_s16  ;;  %p1064_p12 = scmp.lt.s32.totalorder %s1055_s16, %s1055_s16 }
  0x28   : > { %p1058_p10 = pnand %p1056_p9, %p1044_p13  ;;  %p1065_p0 = por %p1064_p12, %p1063_p2 }
  0x2a   : > { %p1059_p1 = pneg %p1058_p10 }
  0x2c   : > { %p1066_p6 = pnand %p1065_p0, %p1059_p1 }
  0x2e   : > { %1069 = shalt.err (!%p1066_p6)
}
  0x2f   : > { %s1256_s17 = smov 128   ;;  %s1257_s25 = smov 8  }
  0x30   : > { %927 = dma.hbm_to_vmem [thread:$0]  (!%p1360_p11), %s1637_s2, 2048, %s1353_s30, [#allocation6], %s1256_s17, %s1256_s17, %s1257_s25  }
  0x31   : > { %s1638_s4 = sld [smem:[#allocation20_spill]] }
  0x37   : > { %s1070_s11 = scalar_lea.hbm %s1638_s4, 256 }
  0x38   : > { %p1071_p2 = scmp.ne.s32.totalorder %s1638_s4, %s1070_s11  ;;  %p1077_p10 = scmp.lt.u32.totalorder %s1070_s11, %s1638_s4 }
  0x3a   : > { %p1073_p1 = pnand %p1071_p2, %p1044_p13 }
  0x3c   : > { %p1074_p6 = pneg %p1073_p1 }
  0x3e   : > { %p1079_p3 = pnand %p1077_p10, %p1074_p6 }
  0x40   : > { %1082 = shalt.err (!%p1079_p3)
}
  0x41   : > { %s1083_s30 = scalar_lea.vmem %s1364_s8, 256  ;;  %p1091_p12 = scmp.lt.s32.totalorder %s1364_s8, %s1364_s8 }
  0x42   : > { %p1084_p5 = scmp.ne.s32.totalorder %s1364_s8, %s1083_s30  ;;  %p1092_p0 = scmp.lt.s32.totalorder %s1083_s30, %s1083_s30 }
  0x44   : > { %p1086_p7 = pnand %p1084_p5, %p1044_p13  ;;  %p1093_p2 = por %p1092_p0, %p1091_p12 }
  0x46   : > { %p1087_p9 = pneg %p1086_p7 }
  0x48   : > { %p1094_p1 = pnand %p1093_p2, %p1087_p9 }
  0x4a   : > { %1097 = shalt.err (!%p1094_p1)
}
  0x4b   : > { %930 = dma.hbm_to_vmem [thread:$0]  (!%p1360_p11), %s1638_s4, 256, %s1364_s8, [#allocation9], %s1256_s17, %s1256_s17, %s1257_s25  }
  0x4c   : > { %s37_s7 = sadd.s32 1, %s1248_s22  ;;  %s46_s9 = sadd.s32 1, %s1240_s20 }
  0x4d   : > { %p39_p13 = scmp.ge.s32.totalorder %s37_s7, 2  ;;  %p53_p6 = scmp.ne.s32.totalorder %s1240_s20, %s1236_s19 }
  0x4e   : > { %p54_p10 = scmp.eq.s32.totalorder %s1252_s23, 0  ;;  %p944_p3 = scmp.lt.s32.totalorder %s1252_s23, 2 }
  0x4f   : > { %s1663_s7 = smov (%p39_p13, %s37_s7), 0  ;;  %p1640_p7 = scmp.eq.s32.totalorder %s1330_s24, 1 }
  0x50   : > { %1639 = sst [smem:[#allocation16_spill]] %s1663_s7  ;;  %p55_p5 = por %p54_p10, %p53_p6 }
  0x51   : > { %p1428_p9 = por %p1640_p7, %p53_p6  ;;  %s41_s10 = ssub.s32 %s1248_s22, %s1663_s7 }
  0x52   : > { %s1435_s11 = sand.u32 1, %s1240_s20   ;;  %p44_p11 = scmp.eq.s32.totalorder %s41_s10, 0 }
  0x53   : > { %s1641_s6 = scalar_select %p1428_p9, 1, 0 }
  0x54   : > { %s855_s8 = sshll.u32 %s1435_s11, 5  ;;  %s1625_s17 = sshll.u32 %s1248_s22, 9 }
  0x55   : > { %s1440_s25 = scalar_select %p44_p11, %s1240_s20, %s46_s9  }
  0x56   : > { %s1643_s0 = sld [smem:[#allocation18_spill]]  ;;  %s251_s15 = scalar_lea.vmem [#allocation2], %s855_s8 }
  0x57   : > { %1642 = sst [smem:[#allocation17_spill]] %s1440_s25  ;;  %s261_s30 = sshll.u32 %s251_s15, 4  ;;  %s1455_s30 = int_to_ptr.vmem [resolvable:$true] %s261_s30 }
  0x58   : > { %p1451_p12 = pnand %p944_p3, %p55_p5  ;;  %s248_s29 = scalar_lea.sflag [#allocation3], %s1435_s11 }
  0x5a   : > { %p1100_p2 = pneg %p1451_p12 }
  0x5c   : > { %s1447_s14 = scalar_lea.hbm %s1643_s0, %s1625_s17  ;;  %s1103_s12 = scalar_lea.hbm %s1643_s0, 1024 }
  0x5d   : > { %s1098_s9 = scalar_lea.hbm %s1447_s14, 512  ;;  %p1104_p6 = scmp.lt.u32.totalorder %s1447_s14, %s1643_s0 }
  0x5e   : > { %p1099_p0 = scmp.ne.s32.totalorder %s1447_s14, %s1098_s9  ;;  %p1105_p10 = scmp.lt.u32.totalorder %s1103_s12, %s1098_s9 }
  0x5f   : > { %p1107_p5 = scmp.lt.u32.totalorder %s1098_s9, %s1447_s14 }
  0x60   : > { %p1101_p1 = pnand %p1100_p2, %p1099_p0  ;;  %p1106_p3 = por %p1105_p10, %p1104_p6 }
  0x62   : > { %p1102_p13 = pneg %p1101_p1  ;;  %p1108_p7 = por %p1107_p5, %p1106_p3 }
  0x64   : > { %p1109_p11 = pnand %p1108_p7, %p1102_p13 }
  0x66   : > { %1112 = shalt.err (!%p1109_p11)
}
  0x67   : > { %s1113_s17 = scalar_lea.vmem %s1455_s30, 512  ;;  %s1258_s10 = smov [#allocation2]  }
  0x68   : > { %p1114_p0 = scmp.ne.s32.totalorder %s1455_s30, %s1113_s17  ;;  %s1118_s8 = sshll.u32 %s1258_s10, 4  ;;  %s1119_s8 = int_to_ptr.vmem [resolvable:$false] %s1118_s8 }
  0x69   : > { %s1120_s13 = scalar_lea.vmem %s1119_s8, 1024  ;;  %p1121_p4 = scmp.lt.s32.totalorder %s1455_s30, %s1119_s8 }
  0x6a   : > { %p1116_p1 = pnand %p1114_p0, %p1100_p2  ;;  %p1122_p6 = scmp.lt.s32.totalorder %s1120_s13, %s1113_s17 }
  0x6c   : > { %p1117_p9 = pneg %p1116_p1  ;;  %p1123_p10 = por %p1122_p6, %p1121_p4 }
  0x6e   : > { %p1124_p3 = pnand %p1123_p10, %p1117_p9 }
  0x70   : > { %1127 = shalt.err (!%p1124_p3)
}
  0x71   : > { %s1259_s9 = smov 256   ;;  %s1260_s12 = smov 16  }
  0x72   : > { %934 = dma.hbm_to_vmem [thread:$0]  (!%p1451_p12), %s1447_s14, 512, %s1455_s30, %s248_s29, %s1259_s9, %s1259_s9, %s1260_s12  }
  0x73   : > { %s271_s15 = sand.u32 1, %s1252_s23   ;;  %s858_s10 = sshll.u32 %s1435_s11, 4 }
  0x74   : > { %s1645_s8 = sshll.u32 %s1248_s22, 9  ;;  %s275_s2 = scalar_lea.vmem [#allocation5], %s858_s10 }
  0x75   : > { %s1492_s0 = scalar_lea.hbm %s1619_s1, %s1645_s8  ;;  %s289_s4 = sshll.u32 %s275_s2, 4  ;;  %s290_s4 = int_to_ptr.vmem [resolvable:$true] %s289_s4 }
  0x76   : > { %s272_s7 = scalar_lea.sflag [#allocation6], %s271_s15  ;;  %s1128_s25 = scalar_lea.hbm %s1492_s0, 256 }
  0x77   : > { %p1129_p4 = scmp.ne.s32.totalorder %s1492_s0, %s1128_s25  ;;  %s1133_s30 = scalar_lea.hbm %s1619_s1, 1024 }
  0x78   : > { %p1134_p5 = scmp.lt.u32.totalorder %s1492_s0, %s1619_s1  ;;  %p1135_p7 = scmp.lt.u32.totalorder %s1133_s30, %s1128_s25 }
  0x79   : > { %p1131_p9 = pnand %p1129_p4, %p1100_p2  ;;  %p1137_p0 = scmp.lt.u32.totalorder %s1128_s25, %s1492_s0 }
  0x7a   : > { %p1136_p11 = por %p1135_p7, %p1134_p5 }
  0x7b   : > { %p1132_p13 = pneg %p1131_p9 }
  0x7c   : > { %p1138_p1 = por %p1137_p0, %p1136_p11 }
  0x7e   : > { %p1139_p6 = pnand %p1138_p1, %p1132_p13 }
  0x80   : > { %1142 = shalt.err (!%p1139_p6)
}
  0x81   : > { %s1143_s2 = scalar_lea.vmem %s290_s4, 256  ;;  %s1261_s12 = smov [#allocation5]  }
  0x82   : > { %p1144_p10 = scmp.ne.s32.totalorder %s290_s4, %s1143_s2  ;;  %s1148_s15 = sshll.u32 %s1261_s12, 4  ;;  %s1149_s15 = int_to_ptr.vmem [resolvable:$false] %s1148_s15 }
  0x83   : > { %s1150_s10 = scalar_lea.vmem %s1149_s15, 512  ;;  %p1151_p9 = scmp.lt.s32.totalorder %s290_s4, %s1149_s15 }
  0x84   : > { %p1146_p3 = pnand %p1144_p10, %p1100_p2  ;;  %p1152_p8 = scmp.lt.s32.totalorder %s1150_s10, %s1143_s2 }
  0x86   : > { %p1147_p4 = pneg %p1146_p3  ;;  %p1153_p5 = por %p1152_p8, %p1151_p9 }
  0x88   : > { %p1154_p7 = pnand %p1153_p5, %p1147_p4 }
  0x8a   : > { %1157 = shalt.err (!%p1154_p7)
}
  0x8b   : > { %937 = dma.hbm_to_vmem [thread:$0]  (!%p1451_p12), %s1492_s0, 256, %s290_s4, %s272_s7  }
  0x8c   : > { %p1646_p13 = scmp.ne.s32.totalorder %s1635_s28, 0 }
  0x8d   : > { %s1516_s25 = sand.u32 (!%p1646_p13), 1, %s1236_s19   ;;  %p1647_p8 = scmp.ne.s32.totalorder (!%p1646_p13), %s1633_s26, 0 }
  0x8e   : > { %298 = sbr.rel (%p1646_p13) target bundleno = 555 (0x22b), region = 40  ;;  %s862_s8 = sshll.u32 (!%p1646_p13), %s1516_s25, 5 }
  0x8f   : > { %s301_s17 = scalar_lea.sflag (!%p1646_p13), [#allocation3], %s1516_s25  ;;  %s1520_s13 = scalar_lea.vmem (!%p1646_p13), [#allocation2], %s862_s8 }
  0x95   : > { %1211 = dma.done.wait (%p1647_p8), %s301_s17, 512  }
  0x96   : > { %1213 = vsyncadd (%p1647_p8), %s301_s17, 4294966784  ;;  %s309_s0 = sand.u32 1, %s1330_s24   ;;  %s863_s4 = sshll.u32 %s1516_s25, 4 }
  0x97   : > { %s310_s28 = scalar_lea.sflag [#allocation6], %s309_s0  ;;  %s1530_s7 = scalar_lea.vmem [#allocation5], %s863_s4 }
  0x98   : > { %1215 = dma.done.wait (%p1647_p8), %s310_s28, 256  }
  0x99   : > { %1217 = vsyncadd (%p1647_p8), %s310_s28, 4294967040  ;;  %p1648_p12 = scmp.eq.s32.totalorder %s1330_s24, 0 }
  0x9b   : > { %1219 = dma.done.wait (%p1648_p12), [#allocation6], 2048   ;;  %p1649_p2 = pmov %p1648_p12 }
  0x9d   : > { %1221 = vsyncadd (%p1649_p2), [#allocation6], 4294965248  ;;  %p1650_p11 = pmov %p1649_p2 }
  0x9e   : > { %p1651_p0 = pmov %p1649_p2 }
  0x9f   : > { %1223 = dma.done.wait (%p1650_p11), [#allocation9], 256  }
  0xa0   : > { %1225 = vsyncadd (%p1651_p0), [#allocation9], 4294967040  ;;  %v1262_v0 = vmov 0   ;;  %v1263_v1 = vmov 0.0   ;;  %v1010_v2 = vld [vmem:[#allocation7 + $0x4] ss:$8 sps:$4 sm:$0xff]   ;;  %v393_v20 = vlaneseq }
  0xa1   : > { %610 = vmatprep.mubr.bf16.mxu0 %v1262_v0  ;;  %620 = vmatprep.mubr.bf16.mxu1 %v1262_v0  ;;  %v1012_v3 = vld [vmem:[#allocation7] ss:$8 sps:$4 sm:$0xff]   ;;  %v1013_v4 = vld [vmem:[#allocation7 + $0x14] ss:$8 sps:$4 sm:$0xff]   ;;  %v1015_v5 = vld [vmem:[#allocation7 + $0x10] ss:$8 sps:$4 sm:$0xff]  }
  0xa2   : > { %1008 = vset.pattern.permute.xlu0 %v1262_v0  ;;  %1009 = vset.pattern.permute.xlu1 %v1262_v0  ;;  %v1016_v6 = vld [vmem:[#allocation7 + $0x24] ss:$8 sps:$4 sm:$0xff]   ;;  %v1018_v7 = vld [vmem:[#allocation7 + $0x20] ss:$8 sps:$4 sm:$0xff]   ;;  %v1019_v8 = vld [vmem:[#allocation7 + $0x34] ss:$8 sps:$4 sm:$0xff]  }
  0xa3   : > { %478 = vperm.xlu1 %1009, %v1263_v1   ;;  %578 = vmatprep.subr.bf16.mxu0 %v1010_v2  ;;  %v1021_v9 = vld [vmem:[#allocation7 + $0x30] ss:$8 sps:$4 sm:$0xff]   ;;  %v362_v10 = vld [vmem:[%s1520_s13] sm:$0xff]  ;;  %vm378_vm0 = vcmask 1042432   ;;  %v363_v17 = vld [vmem:[%s1520_s13 + $0x8] sm:$0xff]  ;;  %v394_v34 = vshrl.u32 %v393_v20, 7 }
  0xa4   : > { %894 = vmatprep.subr.bf16.mxu1 %v1010_v2  ;;  %579 = vmatpush1.bf16.msra.mxu0 %v1012_v3  ;;  %v1022_v11 = vld [vmem:[#allocation7 + $0x44] ss:$8 sps:$4 sm:$0xff]   ;;  %v364_v12 = vld [vmem:[%s1520_s13 + $0x10] sm:$0xff]  ;;  %v379_v14 = vrot.slane %v362_v10, 5  ;;  %v365_v19 = vld [vmem:[%s1520_s13 + $0x18] sm:$0xff]  ;;  %v380_v22 = vrot.slane %v363_v17, 5 }
  0xa5   : > { %902 = vmatpush1.bf16.msra.mxu1 %v1012_v3  ;;  %580 = vmatprep.subr.bf16.mxu0 %v1013_v4  ;;  %v366_v13 = vld [vmem:[%s1530_s7] sm:$0xff]  ;;  %v381_v16 = vrot.slane %v364_v12, 5  ;;  %v367_v18 = vld [vmem:[%s1530_s7 + $0x8] sm:$0xff]  ;;  %v383_v23 = vrot.slane %v365_v19, 5  ;;  %v395_v41 = vadd.s32 8, %v394_v34  ;;  %v399_v44 = vadd.s32 4294967293, %v394_v34 }
  0xa6   : > { %895 = vmatprep.subr.bf16.mxu1 %v1013_v4  ;;  %v370_v15 = vrot.slane %v366_v13, 5  ;;  %v371_v21 = vrot.slane %v367_v18, 5  ;;  %v1024_v26 = vld [vmem:[#allocation7 + $0x40] ss:$8 sps:$4 sm:$0xff]   ;;  %v1025_v31 = vld [vmem:[#allocation7 + $0x54] ss:$8 sps:$4 sm:$0xff]  }
  0xa7   : > { %v382_v24 = vsel %vm378_vm0, %v379_v14, %v381_v16  ;;  %v384_v30 = vsel %vm378_vm0, %v380_v22, %v383_v23  ;;  %v1027_v39 = vld [vmem:[#allocation7 + $0x50] ss:$8 sps:$4 sm:$0xff]   ;;  %v1028_v40 = vld [vmem:[#allocation7 + $0x64] ss:$8 sps:$4 sm:$0xff]   ;;  %v1030_v42 = vld [vmem:[#allocation7 + $0x60] ss:$8 sps:$4 sm:$0xff]  }
  0xa8   : > { %581 = vmatpush1.bf16.msra.mxu0 %v1015_v5  ;;  %v391_v25 = vsel %vm378_vm0, %v370_v15, %v379_v14  ;;  %v404_v28 = vmul.f32 2.3025851, %v382_v24  ;;  %v392_v29 = vsel %vm378_vm0, %v371_v21, %v380_v22  ;;  %v405_v33 = vmul.f32 2.3025851, %v384_v30  ;;  %v1031_v43 = vld [vmem:[#allocation7 + $0x74] ss:$8 sps:$4 sm:$0xff]  }
  0xa9   : > { %903 = vmatpush1.bf16.msra.mxu1 %v1015_v5  ;;  %582 = vmatprep.subr.bf16.mxu0 %v1016_v6  ;;  %v402_v27 = vmul.f32 2.3025851, %v391_v25  ;;  %v403_v32 = vmul.f32 2.3025851, %v392_v29  ;;  %v400_v45 = vadd.s32 4294967293, %v395_v41  ;;  %vm426_vm1 = vcmp.ge.s32.totalorder %v399_v44, 0 }
  0xaa   : > { %896 = vmatprep.subr.bf16.mxu1 %v1016_v6  ;;  %v412_v36 = vmul.f32 1.442695, %v404_v28  ;;  %v414_v38 = vmul.f32 1.442695, %v405_v33  ;;  %v1033_v46 = vld [vmem:[#allocation7 + $0x70] ss:$8 sps:$4 sm:$0xff]  }
  0xab   : > { %v408_v35 = vmul.f32 1.442695, %v402_v27  ;;  %v410_v37 = vmul.f32 1.442695, %v403_v32  ;;  %vm430_vm2 = vcmp.lt.s32.totalorder %v400_v45, 8  ;;  %v1264_v56 = vmov 0.0|0.0  }
  0xac   : > { %583 = vmatpush1.bf16.msra.mxu0 %v1018_v7  ;;  %vm883_vm3 = vmpackc.low %vm430_vm2, %vm426_vm1  ;;  %v484_v59 = vsub.s32 0, %v394_v34  ;;  %v465_v60 = vld [vmem:[%s1621_s3] sm:$0x3]  ;;  %v488_v61 = vsub.s32 1, %v394_v34  ;;  %vm632_vm4 = vcmask 1040384   ;;  %s1265_s16 = smov 64  }
  0xad   : > { %904 = vmatpush1.bf16.msra.mxu1 %v1018_v7  ;;  %584 = vmatprep.subr.bf16.mxu0 %v1019_v8  ;;  %1034 = vpow2.f32 %v408_v35  ;;  %vm653_vm5 = vcmask 1041408   ;;  %vm693_vm6 = vcmask 523267   ;;  %s352_s11 = scalar_lea.vmem [#allocation10], %s863_s4  ;;  %s893_s30 = sshll.u32 %s1244_s21, 8  ;;  %vm695_vm7 = vcmask 523264  }
  0xae   : > { %897 = vmatprep.subr.bf16.mxu1 %v1019_v8  ;;  %1036 = vpow2.f32 %v412_v36  ;;  %v485_v63 = vrot.slane %v465_v60, %v484_v59  ;;  %v489_v1 = vrot.slane %v465_v60, %v488_v61  ;;  %s715_s14 = sshll.u32 %s352_s11, 4  ;;  %vm697_vm8 = vcmask 518144   ;;  %s1569_s2 = scalar_lea.hbm %s1623_s5, %s893_s30  ;;  %s1564_s14 = int_to_ptr.vmem [resolvable:$true] %s715_s14 }
  0xaf   : > { %1038 = vpow2.f32 %v410_v37  ;;  %v680_v37 = vld [vmem:[#allocation8] sm:$0xff]  ;;  %s700_s21 = scalar_lea.sflag [#allocation4], %s1516_s25  ;;  %s1158_s12 = scalar_lea.vmem %s1564_s14, 256 }
  0xb0   : > { %585 = vmatpush1.bf16.msra.mxu0 %v1021_v9  ;;  %1040 = vpow2.f32 %v414_v38  ;;  %v684_v41 = vrot.slane %v680_v37, 5  ;;  %p1159_p1 = scmp.ne.s32.totalorder %s1564_s14, %s1158_s12  ;;  %p1652_p6 = scmp.ne.s32.totalorder %s1641_s6, 0 }
  0xb1   : > { %905 = vmatpush1.bf16.msra.mxu1 %v1021_v9  ;;  %586 = vmatprep.subr.bf16.mxu0 %v1022_v11  ;;  %s1266_s15 = smov [#allocation10]  }
  0xb2   : > { %898 = vmatprep.subr.bf16.mxu1 %v1022_v11  ;;  %p1160_p10 = pnand %p1159_p1, %p1652_p6  ;;  %s1162_s10 = sshll.u32 %s1266_s15, 4  ;;  %s1163_s10 = int_to_ptr.vmem [resolvable:$false] %s1162_s10 }
  0xb3   : > { %s1164_s8 = scalar_lea.vmem %s1163_s10, 512  ;;  %p1165_p4 = scmp.lt.s32.totalorder %s1564_s14, %s1163_s10 }
  0xb4   : > { %587 = vmatpush1.bf16.msra.mxu0 %v1024_v26  ;;  %p1161_p3 = pneg %p1160_p10  ;;  %p1166_p9 = scmp.lt.s32.totalorder %s1164_s8, %s1158_s12 }
  0xb5   : > { %906 = vmatpush1.bf16.msra.mxu1 %v1024_v26  ;;  %588 = vmatprep.subr.bf16.mxu0 %v1025_v31 }
  0xb6   : > { %899 = vmatprep.subr.bf16.mxu1 %v1025_v31  ;;  %p1167_p5 = por %p1166_p9, %p1165_p4 }
  0xb7   : > { %v1035_v47 = vpop.eup %1034 }
  0xb8   : > { %589 = vmatpush1.bf16.msra.mxu0 %v1027_v39  ;;  %v1037_v48 = vpop.eup %1036  ;;  %v420_v49 = vmax.f32 %v1035_v47, 1e-10  ;;  %p1168_p7 = pnand %p1167_p5, %p1161_p3 }
  0xb9   : > { %907 = vmatpush1.bf16.msra.mxu1 %v1027_v39  ;;  %590 = vmatprep.subr.bf16.mxu0 %v1028_v40  ;;  %v1039_v50 = vpop.eup %1038  ;;  %v422_v51 = vmax.f32 %v1037_v48, 1e-10 }
  0xba   : > { %900 = vmatprep.subr.bf16.mxu1 %v1028_v40  ;;  %v1041_v52 = vpop.eup %1040  ;;  %v421_v53 = vmax.f32 %v1039_v50, 1e-10  ;;  %v681_v40 = vld [vmem:[#allocation8 + $0x8] sm:$0xff] }
  0xbb   : > { %v884_v54 = vpack.c.bf16 %v422_v51, %v420_v49  ;;  %v423_v55 = vmax.f32 %v1041_v52, 1e-10  ;;  %v685_v47 = vrot.slane %v681_v40, 5 }
  0xbc   : > { %591 = vmatpush1.bf16.msra.mxu0 %v1030_v42  ;;  %v442_v57 = vsel %vm426_vm1, %v421_v53, 0.0 }
  0xbd   : > { %908 = vmatpush1.bf16.msra.mxu1 %v1030_v42  ;;  %592 = vmatprep.subr.bf16.mxu0 %v1031_v43  ;;  %v444_v58 = vsel %vm430_vm2, %v423_v55, 0.0  ;;  %v686_v53 = vsel %vm378_vm0, %v684_v41, %v685_v47 }
  0xbe   : > { %901 = vmatprep.subr.bf16.mxu1 %v1031_v43  ;;  %468 = vperm.xlu0 %1008, %v442_v57  }
  0xc0   : > { %593 = vmatpush1.bf16.msra.mxu0 %v1033_v46 }
  0xc1   : > { %909 = vmatpush1.bf16.msra.mxu1 %v1033_v46 }
  0xc2   : > { %473 = vperm.xlu0 %1008, %v444_v58  }
  0xc3   : > { %885 = vmatmul.mubr.msk.bf16.vlgmr.msra.gmra.mrb[0].mxu0 %vm883_vm3, %v884_v54 }
  0xc4   : > { %621 = vmatmul.mubr.bf16.vlgmr.msra.gmra.mrb[0].mxu1 %v1264_v56 }
 0x122   : > { %v479_v0 = vpop.permute.xlu1 %478 }
 0x123   : > { %v496_v2 = vmul.f32 %v485_v63, %v479_v0  ;;  %v497_v4 = vmul.f32 %v489_v1, %v479_v0 }
 0x13d   : > { %v469_v62 = vpop.permute.xlu0 %468 }
 0x13e   : > { %v492_v3 = vmul.f32 %v485_v63, %v469_v62  ;;  %v493_v5 = vmul.f32 %v489_v1, %v469_v62 }
 0x141   : > { %v474_v6 = vpop.permute.xlu0 %473 }
 0x142   : > { %v494_v11 = vmul.f32 %v485_v63, %v474_v6  ;;  %v495_v16 = vmul.f32 %v489_v1, %v474_v6 }
 0x196   : > { %v612_v8 = vpop.f32.mrb[0].mxu0 }
 0x197   : > { %v622_v7 = vpop.f32.mrb[0].mxu1  ;;  %v613_v12 = vadd.f32 %v612_v8, %v492_v3  ;;  %v614_v13 = vpop.f32.mrb[1].mxu0 }
 0x198   : > { %v623_v9 = vadd.f32 %v622_v7, %v496_v2  ;;  %v624_v10 = vpop.f32.mrb[1].mxu1  ;;  %v615_v17 = vadd.f32 %v614_v13, %v493_v5  ;;  %v616_v18 = vpop.f32.mrb[2].mxu0 }
 0x199   : > { %v625_v14 = vadd.f32 %v624_v10, %v497_v4  ;;  %v626_v15 = vpop.f32.mrb[2].mxu1  ;;  %v633_v20 = vrot.slane %v613_v12, 7  ;;  %v617_v22 = vadd.f32 %v616_v18, %v494_v11  ;;  %v618_v23 = vpop.f32.mrb[3].mxu0 }
 0x19a   : > { %v627_v19 = vpop.f32.mrb[3].mxu1  ;;  %v636_v21 = vrot.slane %v623_v9, 7  ;;  %v665_v24 = vrot.slane %v615_v17, 5  ;;  %v619_v26 = vadd.f32 %v618_v23, %v495_v16  ;;  %v654_v28 = vrot.slane %v615_v17, 6 }
 0x19b   : > { %v657_v25 = vrot.slane %v625_v14, 6  ;;  %v634_v27 = vrot.slane %v617_v22, 7  ;;  %638 = vrot.lane.b32.xlu1 %v633_v20, %s1265_s16 }
 0x19c   : > { %v655_v29 = vrot.slane %v619_v26, 6  ;;  %v666_v30 = vrot.slane %v619_v26, 5  ;;  %668 = vrot.lane.b32.xlu0 %v665_v24, %s1265_s16 }
 0x19d   : > { %v637_v31 = vsel %vm632_vm4, %v634_v27, %v636_v21  ;;  %v635_v35 = vsel %vm632_vm4, %v633_v20, %v634_v27 }
 0x19e   : > { %v667_v32 = vsel %vm378_vm0, %v665_v24, %v666_v30  ;;  %v656_v33 = vsel %vm653_vm5, %v654_v28, %v655_v29  ;;  %v658_v34 = vsel %vm653_vm5, %v655_v29, %v657_v25 }
 0x19f   : > { %642 = vrot.lane.b32.xlu1 %v637_v31, %s1265_s16 }
 0x1a0   : > { %640 = vrot.lane.b32.xlu0 %v635_v35, %s1265_s16 }
 0x1a3   : > { %670 = vrot.lane.b32.xlu1 %v667_v32, %s1265_s16 }
 0x1a4   : > { %672 = vrot.lane.b32.xlu0 %v666_v30, %s1265_s16 }
 0x20d   : > { %v639_v36 = vpop.permute.xlu1 %638 }
 0x20e   : > { %v647_v38 = vadd.f32 %v639_v36, %v613_v12  ;;  %v669_v39 = vpop.permute.xlu0 %668 }
 0x210   : > { %v662_v42 = vadd.f32 %v654_v28, %v647_v38 }
 0x211   : > { %v643_v43 = vpop.permute.xlu1 %642 }
 0x212   : > { %v677_v44 = vadd.f32 %v669_v39, %v662_v42  ;;  %v649_v45 = vadd.f32 %v643_v43, %v623_v9  ;;  %v641_v46 = vpop.permute.xlu0 %640 }
 0x213   : > { %v648_v48 = vadd.f32 %v641_v46, %v617_v22 }
 0x214   : > { %v690_v49 = vmul.f32 %v684_v41, %v677_v44  ;;  %v664_v50 = vadd.f32 %v658_v34, %v649_v45 }
 0x215   : > { %v671_v51 = vpop.permute.xlu1 %670  ;;  %v663_v52 = vadd.f32 %v656_v33, %v648_v48 }
 0x216   : > { %694 = vst.msk [vmem:[%s352_s11 - $0x3] sm:$0xf8] %vm693_vm6, %v690_v49  ;;  %v673_v54 = vpop.permute.xlu0 %672 }
 0x217   : > { %v678_v55 = vadd.f32 %v671_v51, %v663_v52  ;;  %v679_v56 = vadd.f32 %v673_v54, %v664_v50 }
 0x219   : > { %v691_v57 = vmul.f32 %v686_v53, %v678_v55  ;;  %v692_v58 = vmul.f32 %v685_v47, %v679_v56 }
 0x21b   : > { %696 = vst.msk [vmem:[%s352_s11 + $0x5] sm:$0xff] %vm695_vm7, %v691_v57 }
 0x21c   : > { %698 = vst.msk [vmem:[%s352_s11 + $0xd] sm:$0x7] %vm697_vm8, %v692_v58 }
 0x21d   : > { %1171 = shalt.err (!%p1168_p7)
}
 0x21e   : > { %s1172_s17 = scalar_lea.hbm %s1569_s2, 256  ;;  %s1176_s4 = scalar_lea.hbm %s1623_s5, 512 }
 0x21f   : > { %p1173_p13 = scmp.ne.s32.totalorder %s1569_s2, %s1172_s17  ;;  %p1177_p2 = scmp.lt.u32.totalorder %s1569_s2, %s1623_s5 }
 0x220   : > { %p1178_p11 = scmp.lt.u32.totalorder %s1176_s4, %s1172_s17  ;;  %p1180_p1 = scmp.lt.u32.totalorder %s1172_s17, %s1569_s2 }
 0x221   : > { %p1174_p8 = pnand %p1173_p13, %p1652_p6 }
 0x222   : > { %p1179_p0 = por %p1178_p11, %p1177_p2 }
 0x223   : > { %p1175_p12 = pneg %p1174_p8 }
 0x224   : > { %p1181_p10 = por %p1180_p1, %p1179_p0 }
 0x226   : > { %p1182_p3 = pnand %p1181_p10, %p1175_p12 }
 0x228   : > { %1185 = shalt.err (!%p1182_p3)
}
 0x229   : > { %s1267_s24 = smov 128   ;;  %s1268_s26 = smov 8  }
 0x22a   : > { %922 = dma.vmem_to_hbm [thread:$0]  (%p1652_p6), %s1564_s14, 256, %s1569_s2, %s700_s21, %s1267_s24, %s1267_s24, %s1268_s26  }
 0x22b PF: > { %s730_s16 = sand.u32 1, %s1232_s18   ;;  %p1653_p4 = scmp.ne.s32.totalorder %s1634_s27, 0 }
 0x22c   : > { %p1654_p9 = scmp.ge.s32.totalorder %s1252_s23, 2  ;;  %s731_s11 = scalar_lea.sflag [#allocation4], %s730_s16 }
 0x22e   : > { %p939_p5 = pnand %p1654_p9, %p1653_p4 }
 0x230   : > { %1227 = dma.done.wait (!%p939_p5), %s731_s11, 256  }
 0x231   : > { %1229 = vsyncadd (!%p939_p5), %s731_s11, 4294967040  ;;  %s25_s23 = sadd.s32 1, %s1252_s23   ;;  %s1655_s30 = sld [smem:[#allocation17_spill]] }
 0x232   : > { %p22_p7 = scmp.ge.s32.totalorder %s25_s23, 4   ;;  %s1656_s6 = sld [smem:[#allocation16_spill]] }
 0x233   : > { %s1657_s18 = smov %s1236_s19  ;;  %s1658_s19 = smov %s1240_s20 }
 0x234   : > { %s1660_s21 = smov %s1248_s22  ;;  %24 = sbr.rel (!%p22_p7) target bundleno = 13 (0xd), region = 107 }
 0x237   : > { %s1659_s20 = smov %s1655_s30 }
 0x238   : > { %s1661_s22 = smov %s1656_s6 }
 0x23b   :  { %736 = vsyncpa [#allocation3], 1 }
 0x23c   :  { %738 = vsyncpa [#allocation3 + $0x1], 1 }
 0x23d   :  { %739 = vsyncpa [#allocation6], 1 }
 0x23e   :  { %741 = vsyncpa [#allocation6 + $0x1], 1 }
 0x23f   :  { %742 = vsyncpa [#allocation9], 1 }
 0x240   :  { %743 = vsyncpa [#allocation4], 1 }
 0x241   :  { %745 = vsyncpa [#allocation4 + $0x1], 1 }

</bundles_post_ra>
